<compile_context>
chip_gen: v7x
topology: tpu7x:2x2x1
jax: 0.10.0
libtpu: 0.0.40
codegen_flags: <defaults>
</compile_context>

<pallas_src>
import jax
import jax.numpy as jnp
from jax.experimental import pallas as pl
from jax.experimental.pallas import tpu as pltpu


def _elu(x):
    # ELU with alpha=1.0 (PyTorch default), overflow-safe exp argument.
    return jnp.where(x > 0, x, jnp.exp(jnp.minimum(x, 0.0)) - 1.0)


def mlp_ddhs_kernel(xT_ref, w1_ref, b1_ref, w2_ref, b2_ref, w3_ref, b3_ref,
                    o_ref):
    xT = xT_ref[...]                                        # [L, Bt]  bf16

    # Layer 1: [H1, L] @ [L, Bt] -> [H1, Bt]   (bf16 MXU, f32 accumulation)
    h1 = jnp.dot(w1_ref[...], xT, preferred_element_type=jnp.float32)
    h1 = _elu(h1 + b1_ref[...])                             # f32 VPU/EUP math

    # Layer 2: [H2, H1] @ [H1, Bt] -> [H2, Bt]
    h2 = jnp.dot(w2_ref[...], h1.astype(jnp.bfloat16),
                 preferred_element_type=jnp.float32)
    h2 = _elu(h2 + b2_ref[...])

    # Layer 3: output dim 1 -> VPU multiply + sublane reduction (skip the MXU).
    logits = jnp.sum(h2 * w3_ref[...], axis=0, keepdims=True) + b3_ref[0]
    o_ref[...] = jax.nn.sigmoid(logits).astype(o_ref.dtype)  # [1, Bt] lane-dense


def mlp_classifier_ddhs(x, params, *, block_b=512):
    """Forward pass of MLPClassifier_DDHS with a Pallas TPU kernel.

    x: [B, L] float32
    params (PyTorch [out, in] layout):
        w1 [8L, L],   b1 [8L, 1]
        w2 [16L, 8L], b2 [16L, 1]
        w3 [16L, 1],  b3 [1]
    returns: [B, 1] float32
    """
    B, L = x.shape
    H1, H2 = 8 * L, 16 * L

    # Lane-aligned batch tile. Cap at the 128-rounded batch so small batches
    # don't burn lanes on padding; pad the batch so every tile is full (no
    # silently dropped tail rows).  block_b=512 keeps the per-tile activations
    # (h2: 16L x block_b f32) comfortably inside scoped VMEM even on v7x.
    b_rounded = int(pl.cdiv(max(B, 1), 128)) * 128
    block_b = max(128, (block_b // 128) * 128)
    block_b = min(block_b, b_rounded)
    n_tiles = int(pl.cdiv(B, block_b))
    B_pad = n_tiles * block_b

    xT = jnp.pad(x.astype(jnp.bfloat16).T, ((0, 0), (0, B_pad - B)))

    w1 = params["w1"].astype(jnp.bfloat16)
    w2 = params["w2"].astype(jnp.bfloat16)
    b1 = params["b1"].astype(jnp.float32)
    b2 = params["b2"].astype(jnp.float32)
    w3 = params["w3"].astype(jnp.float32)
    b3 = params["b3"].astype(jnp.float32)

    out = pl.pallas_call(
        mlp_ddhs_kernel,
        out_shape=jax.ShapeDtypeStruct((1, B_pad), jnp.float32),
        grid_spec=pltpu.PrefetchScalarGridSpec(
            num_scalar_prefetch=0,
            grid=(n_tiles,),
            in_specs=[
                pl.BlockSpec((L, block_b), lambda i: (0, i)),        # x^T tile
                pl.BlockSpec((H1, L), lambda i: (0, 0)),             # w1 (resident)
                pl.BlockSpec((H1, 1), lambda i: (0, 0)),             # b1
                pl.BlockSpec((H2, H1), lambda i: (0, 0)),            # w2
                pl.BlockSpec((H2, 1), lambda i: (0, 0)),             # b2
                pl.BlockSpec((H2, 1), lambda i: (0, 0)),             # w3 column
                pl.BlockSpec(memory_space=pltpu.MemorySpace.SMEM),   # b3 scalar
            ],
            out_specs=pl.BlockSpec((1, block_b), lambda i: (0, i)),
        ),
        compiler_params=pltpu.CompilerParams(
            dimension_semantics=("parallel",),
            vmem_limit_bytes=32 * 1024 * 1024,
        ),
    )(xT, w1, b1, w2, b2, w3, b3)

    return out[0, :B].reshape(B, 1)


def init_params(key, latent_dim):
    """PyTorch-layout params with nn.Linear default init
    (uniform(-1/sqrt(fan_in), 1/sqrt(fan_in)))."""
    L, H1, H2 = latent_dim, 8 * latent_dim, 16 * latent_dim
    ks = jax.random.split(key, 6)

    def lin(kw, kb, fan_in, fan_out):
        bound = 1.0 / (fan_in ** 0.5)
        w = jax.random.uniform(kw, (fan_out, fan_in), jnp.float32, -bound, bound)
        b = jax.random.uniform(kb, (fan_out, 1), jnp.float32, -bound, bound)
        return w, b

    w1, b1 = lin(ks[0], ks[1], L, H1)
    w2, b2 = lin(ks[2], ks[3], H1, H2)
    w3t, b3 = lin(ks[4], ks[5], H2, 1)           # w3t: [1, H2], b3: [1, 1]
    return {"w1": w1, "b1": b1, "w2": w2, "b2": b2,
            "w3": w3t.T, "b3": b3.reshape(1)}    # w3: [H2, 1], b3: [1]


def reference_forward(x, p):
    """Plain-JAX f32 reference for correctness checking."""
    h1 = jax.nn.elu(x @ p["w1"].T + p["b1"].T)
    h2 = jax.nn.elu(h1 @ p["w2"].T + p["b2"].T)
    return jax.nn.sigmoid(h2 @ p["w3"] + p["b3"])


if __name__ == "__main__":
    latent_dim = 16   # hidden layers: 128 and 256 -> lane-friendly
    batch = 8

    key = jax.random.PRNGKey(0)
    k_x, k_p = jax.random.split(key)

    x = jax.random.normal(k_x, (batch, latent_dim), dtype=jnp.float32)
    params = init_params(k_p, latent_dim)

    out = jax.block_until_ready(mlp_classifier_ddhs(x, params))
    ref = reference_forward(x, params)

    assert out.shape == (batch, 1), out.shape
    # Kernel runs the first two matmuls in bf16 (f32 accumulation) vs. the
    # f32 reference -> loose absolute tolerance on the (0,1)-bounded output.
    assert jnp.allclose(out, ref, atol=2e-2, rtol=0.0), (out, ref)

    print("KERNEL_OK")
</pallas_src>

<mosaic_0001>
module attributes {stable_mosaic.version = 11 : i64} {
  func.func @mlp_ddhs_kernel(%arg0: i32, %arg1: memref<16x128xbf16, #tpu.memory_space<vmem>>, %arg2: memref<128x16xbf16, #tpu.memory_space<vmem>>, %arg3: memref<128x1xf32, #tpu.memory_space<vmem>>, %arg4: memref<256x128xbf16, #tpu.memory_space<vmem>>, %arg5: memref<256x1xf32, #tpu.memory_space<vmem>>, %arg6: memref<256x1xf32, #tpu.memory_space<vmem>>, %arg7: memref<1xf32, #tpu.memory_space<smem>>, %arg8: memref<1x128xf32, #tpu.memory_space<vmem>>) attributes {dimension_semantics = [#tpu.dimension_semantics<parallel>], iteration_bounds = array<i64: 1>, scalar_prefetch = 0 : i64, scratch_operands = 0 : i64, tpu.core_type = #tpu.core_type<tc>, window_params = [{transform_indices = @transform_0, window_bounds = array<i64: 16, 128>}, {pipeline_mode = #tpu.pipeline_mode<synchronous>, transform_indices = @transform_1, window_bounds = array<i64: 128, 16>}, {pipeline_mode = #tpu.pipeline_mode<synchronous>, transform_indices = @transform_2, window_bounds = array<i64: 128, 1>}, {pipeline_mode = #tpu.pipeline_mode<synchronous>, transform_indices = @transform_3, window_bounds = array<i64: 256, 128>}, {pipeline_mode = #tpu.pipeline_mode<synchronous>, transform_indices = @transform_4, window_bounds = array<i64: 256, 1>}, {pipeline_mode = #tpu.pipeline_mode<synchronous>, transform_indices = @transform_5, window_bounds = array<i64: 256, 1>}, {transform_indices = @transform_6, window_bounds = array<i64: 1>}, {transform_indices = @transform_7, window_bounds = array<i64: 1, 128>}]} {
    %c0 = arith.constant 0 : index
    %c0_0 = arith.constant 0 : index
    %0 = vector.load %arg1[%c0, %c0_0] : memref<16x128xbf16, #tpu.memory_space<vmem>>, vector<16x128xbf16>
    %c0_1 = arith.constant 0 : index
    %c0_2 = arith.constant 0 : index
    %1 = vector.load %arg2[%c0_1, %c0_2] : memref<128x16xbf16, #tpu.memory_space<vmem>>, vector<128x16xbf16>
    %cst = arith.constant dense<0.000000e+00> : vector<128x128xf32>
    %2 = tpu.matmul %1, %0, %cst {dimension_numbers = #tpu.dot_dimension_numbers<[1], [0], [0], [1], [0, 0, 1, 1], [], []>} : vector<128x16xbf16>, vector<16x128xbf16>, vector<128x128xf32> -> vector<128x128xf32>
    %c0_3 = arith.constant 0 : index
    %c0_4 = arith.constant 0 : index
    %3 = vector.load %arg3[%c0_3, %c0_4] : memref<128x1xf32, #tpu.memory_space<vmem>>, vector<128x1xf32>
    %4 = vector.broadcast %3 : vector<128x1xf32> to vector<128x128xf32>
    %5 = arith.addf %2, %4 : vector<128x128xf32>
    %cst_5 = arith.constant 0.000000e+00 : f32
    %6 = vector.broadcast %cst_5 : f32 to vector<128x128xf32>
    %7 = arith.cmpf ogt, %5, %6 : vector<128x128xf32>
    %cst_6 = arith.constant 0.000000e+00 : f32
    %8 = vector.broadcast %cst_6 : f32 to vector<128x128xf32>
    %9 = arith.minimumf %5, %8 : vector<128x128xf32>
    %10 = math.exp %9 : vector<128x128xf32>
    %cst_7 = arith.constant 1.000000e+00 : f32
    %11 = vector.broadcast %cst_7 : f32 to vector<128x128xf32>
    %12 = arith.subf %10, %11 : vector<128x128xf32>
    %13 = arith.select %7, %5, %12 : vector<128x128xi1>, vector<128x128xf32>
    %c0_8 = arith.constant 0 : index
    %c0_9 = arith.constant 0 : index
    %14 = vector.load %arg4[%c0_8, %c0_9] : memref<256x128xbf16, #tpu.memory_space<vmem>>, vector<256x128xbf16>
    %15 = arith.truncf %13 : vector<128x128xf32> to vector<128x128xbf16>
    %cst_10 = arith.constant dense<0.000000e+00> : vector<256x128xf32>
    %16 = tpu.matmul %14, %15, %cst_10 {dimension_numbers = #tpu.dot_dimension_numbers<[1], [0], [0], [1], [0, 0, 1, 1], [], []>} : vector<256x128xbf16>, vector<128x128xbf16>, vector<256x128xf32> -> vector<256x128xf32>
    %c0_11 = arith.constant 0 : index
    %c0_12 = arith.constant 0 : index
    %17 = vector.load %arg5[%c0_11, %c0_12] : memref<256x1xf32, #tpu.memory_space<vmem>>, vector<256x1xf32>
    %18 = vector.broadcast %17 : vector<256x1xf32> to vector<256x128xf32>
    %19 = arith.addf %16, %18 : vector<256x128xf32>
    %cst_13 = arith.constant 0.000000e+00 : f32
    %20 = vector.broadcast %cst_13 : f32 to vector<256x128xf32>
    %21 = arith.cmpf ogt, %19, %20 : vector<256x128xf32>
    %cst_14 = arith.constant 0.000000e+00 : f32
    %22 = vector.broadcast %cst_14 : f32 to vector<256x128xf32>
    %23 = arith.minimumf %19, %22 : vector<256x128xf32>
    %24 = math.exp %23 : vector<256x128xf32>
    %cst_15 = arith.constant 1.000000e+00 : f32
    %25 = vector.broadcast %cst_15 : f32 to vector<256x128xf32>
    %26 = arith.subf %24, %25 : vector<256x128xf32>
    %27 = arith.select %21, %19, %26 : vector<256x128xi1>, vector<256x128xf32>
    %c0_16 = arith.constant 0 : index
    %c0_17 = arith.constant 0 : index
    %28 = vector.load %arg6[%c0_16, %c0_17] : memref<256x1xf32, #tpu.memory_space<vmem>>, vector<256x1xf32>
    %29 = vector.broadcast %28 : vector<256x1xf32> to vector<256x128xf32>
    %30 = arith.mulf %27, %29 : vector<256x128xf32>
    %cst_18 = arith.constant dense<0.000000e+00> : vector<128xf32>
    %31 = vector.multi_reduction <add>, %30, %cst_18 [0] : vector<256x128xf32> to vector<128xf32>
    %32 = vector.shape_cast %31 : vector<128xf32> to vector<1x128xf32>
    %c0_19 = arith.constant 0 : index
    %33 = memref.load %arg7[%c0_19] : memref<1xf32, #tpu.memory_space<smem>>
    %34 = vector.broadcast %33 : f32 to vector<1x128xf32>
    %35 = arith.addf %32, %34 : vector<1x128xf32>
    %36 = arith.negf %35 : vector<1x128xf32>
    %37 = math.exp %36 : vector<1x128xf32>
    %cst_20 = arith.constant 1.000000e+00 : f32
    %38 = vector.broadcast %cst_20 : f32 to vector<1x128xf32>
    %39 = arith.addf %38, %37 : vector<1x128xf32>
    %40 = arith.divf %38, %39 : vector<1x128xf32>
    %c0_21 = arith.constant 0 : index
    %c0_22 = arith.constant 0 : index
    %41 = vector.load %arg8[%c0_21, %c0_22] : memref<1x128xf32, #tpu.memory_space<vmem>>, vector<1x128xf32>
    tpu.vector_store %arg8[%c0_21, %c0_22], %40 {strides = array<i32>} : memref<1x128xf32, #tpu.memory_space<vmem>>, vector<1x128xf32>,
    return
  }
  func.func @transform_0(%arg0: i32) -> (i32, i32) {
    %c0_i32 = arith.constant 0 : i32
    %c0_i32_0 = arith.constant 0 : i32
    return %c0_i32, %arg0 : i32, i32
  }
  func.func @transform_1(%arg0: i32) -> (i32, i32) {
    %c0_i32 = arith.constant 0 : i32
    %c0_i32_0 = arith.constant 0 : i32
    %c0_i32_1 = arith.constant 0 : i32
    return %c0_i32, %c0_i32_0 : i32, i32
  }
  func.func @transform_2(%arg0: i32) -> (i32, i32) {
    %c0_i32 = arith.constant 0 : i32
    %c0_i32_0 = arith.constant 0 : i32
    %c0_i32_1 = arith.constant 0 : i32
    return %c0_i32, %c0_i32_0 : i32, i32
  }
  func.func @transform_3(%arg0: i32) -> (i32, i32) {
    %c0_i32 = arith.constant 0 : i32
    %c0_i32_0 = arith.constant 0 : i32
    %c0_i32_1 = arith.constant 0 : i32
    return %c0_i32, %c0_i32_0 : i32, i32
  }
  func.func @transform_4(%arg0: i32) -> (i32, i32) {
    %c0_i32 = arith.constant 0 : i32
    %c0_i32_0 = arith.constant 0 : i32
    %c0_i32_1 = arith.constant 0 : i32
    return %c0_i32, %c0_i32_0 : i32, i32
  }
  func.func @transform_5(%arg0: i32) -> (i32, i32) {
    %c0_i32 = arith.constant 0 : i32
    %c0_i32_0 = arith.constant 0 : i32
    %c0_i32_1 = arith.constant 0 : i32
    return %c0_i32, %c0_i32_0 : i32, i32
  }
  func.func @transform_6(%arg0: i32) -> i32 {
    %c0_i32 = arith.constant 0 : i32
    %c0_i32_0 = arith.constant 0 : i32
    return %c0_i32 : i32
  }
  func.func @transform_7(%arg0: i32) -> (i32, i32) {
    %c0_i32 = arith.constant 0 : i32
    %c0_i32_0 = arith.constant 0 : i32
    return %c0_i32, %arg0 : i32, i32
  }
}

</mosaic_0001>

<bundles_post_ra>
// kernel: tpu_custom_call.1
= control target key start
LH: loop header
LB: loop body
LE: loop exit
PB: predicated region body
PF: predicated region fallthrough
CT: control target
= control target key end

     0   :  { %v1723_v2 = vmov 0   ;;  %vm189_vm0 = vcmask 130048   ;;  %s2557_s0 = inlined_call_operand.vmem [shape: bf16[16,128], index: 0, kind: input, shape index: {}]   ;;  %s2558_s1 = inlined_call_operand.vmem [shape: bf16[128,16], index: 1, kind: input, shape index: {}]   ;;  %s2559_s2 = inlined_call_operand.vmem [shape: f32[128,1], index: 2, kind: input, shape index: {}]   ;;  %s2560_s3 = inlined_call_operand.vmem [shape: bf16[256,128], index: 3, kind: input, shape index: {}]   ;;  %s2561_s4 = inlined_call_operand.vmem [shape: f32[256,1], index: 4, kind: input, shape index: {}]   ;;  %s2562_s5 = inlined_call_operand.vmem [shape: f32[256,1], index: 5, kind: input, shape index: {}]   ;;  %s2563_s6 = inlined_call_operand.<no memory space> [shape: f32[1], index: 6, kind: input, shape index: {}]   ;;  %s2564_s7 = inlined_call_operand.hbm [shape: f32[1,128], index: 7, kind: output, shape index: {}]  }
   0x1   :  { %v49_v0 = vld [vmem:[%s2559_s2 + $0x10] sm:$0xff]  ;;  %v47_v1 = vld [vmem:[%s2559_s2] sm:$0xff]  ;;  %1573 = vset.pattern.permute.xlu1 %v1723_v2  ;;  %1572 = vset.pattern.permute.xlu0 %v1723_v2  ;;  %v50_v4 = vld [vmem:[%s2559_s2 + $0x18] sm:$0xff] }
   0x2   :  { %v1574_v3 = vld [vmem:[%s2557_s0] sm:$0xff]   ;;  %75 = vperm.xlu1 %1573, %v49_v0   ;;  %65 = vperm.xlu0 %1572, %v47_v1   ;;  %v48_v5 = vld [vmem:[%s2559_s2 + $0x8] sm:$0xff]  ;;  %v1577_v8 = vld [vmem:[%s2558_s1 + $0x10] sm:$0xff]  }
   0x3   :  { %1488 = vmatprep.subr.bf16.mxu0 %v1574_v3  ;;  %v1575_v6 = vld [vmem:[%s2558_s1] sm:$0xff]   ;;  %v1576_v7 = vld [vmem:[%s2558_s1 + $0x8] sm:$0xff]   ;;  %v54_v11 = vld [vmem:[%s2559_s2 + $0x38] sm:$0xff] }
   0x4   :  { %1489 = vmatpush3.bf16.msra.mxu0 %v1574_v3  ;;  %1490 = vmatprep.mubr.msk.bf16.mxu0 %vm189_vm0, %v1575_v6  ;;  %v52_v9 = vld [vmem:[%s2559_s2 + $0x28] sm:$0xff]  ;;  %v51_v10 = vld [vmem:[%s2559_s2 + $0x20] sm:$0xff]  ;;  %v53_v12 = vld [vmem:[%s2559_s2 + $0x30] sm:$0xff] }
   0x5   :  { %v1578_v13 = vld [vmem:[%s2558_s1 + $0x18] sm:$0xff]   ;;  %v1579_v14 = vld [vmem:[%s2558_s1 + $0x20] sm:$0xff]   ;;  %v56_v15 = vld [vmem:[%s2559_s2 + $0x48] sm:$0xff] }
   0x6   :  { %80 = vperm.xlu1 %1573, %v50_v4   ;;  %70 = vperm.xlu0 %1572, %v48_v5   ;;  %v55_v16 = vld [vmem:[%s2559_s2 + $0x40] sm:$0xff]  ;;  %v58_v17 = vld [vmem:[%s2559_s2 + $0x58] sm:$0xff]  ;;  %v57_v18 = vld [vmem:[%s2559_s2 + $0x50] sm:$0xff] }
   0x7   :  { %1491 = vmatmul.mubr.msk.bf16.vlgmr.msra.gmra.mrb[0].mxu0 %vm189_vm0, %v1576_v7  ;;  %v1580_v19 = vld [vmem:[%s2558_s1 + $0x28] sm:$0xff]   ;;  %v1581_v20 = vld [vmem:[%s2558_s1 + $0x30] sm:$0xff]   ;;  %v59_v22 = vld [vmem:[%s2559_s2 + $0x60] sm:$0xff] }
   0x8   :  { %1494 = vmatprep.mubr.msk.bf16.mxu0 %vm189_vm0, %v1577_v8  ;;  %v60_v21 = vld [vmem:[%s2559_s2 + $0x68] sm:$0xff]  ;;  %v62_v23 = vld [vmem:[%s2559_s2 + $0x78] sm:$0xff]  ;;  %v61_v24 = vld [vmem:[%s2559_s2 + $0x70] sm:$0xff] }
   0x9   :  { %v1582_v25 = vld [vmem:[%s2558_s1 + $0x38] sm:$0xff]   ;;  %v448_v26 = vld [vmem:[%s2561_s4 + $0x8] sm:$0xff]  ;;  %v447_v27 = vld [vmem:[%s2561_s4] sm:$0xff] }
   0xa   :  { %90 = vperm.xlu1 %1573, %v52_v9   ;;  %85 = vperm.xlu0 %1572, %v51_v10   ;;  %v450_v28 = vld [vmem:[%s2561_s4 + $0x18] sm:$0xff]  ;;  %v449_v29 = vld [vmem:[%s2561_s4 + $0x10] sm:$0xff]  ;;  %v452_v30 = vld [vmem:[%s2561_s4 + $0x28] sm:$0xff] }
   0xb   :  { %v451_v31 = vld [vmem:[%s2561_s4 + $0x20] sm:$0xff]  ;;  %v454_v32 = vld [vmem:[%s2561_s4 + $0x38] sm:$0xff]  ;;  %v453_v33 = vld [vmem:[%s2561_s4 + $0x30] sm:$0xff] }
   0xe   :  { %100 = vperm.xlu1 %1573, %v54_v11   ;;  %95 = vperm.xlu0 %1572, %v53_v12  }
   0xf   :  { %1495 = vmatmul.mubr.msk.bf16.gmra.mrb[4].mxu0 %vm189_vm0, %v1578_v13 }
  0x10   :  { %1498 = vmatprep.mubr.msk.bf16.mxu0 %vm189_vm0, %v1579_v14 }
  0x12   :  { %110 = vperm.xlu1 %1573, %v56_v15   ;;  %105 = vperm.xlu0 %1572, %v55_v16  }
  0x16   :  { %120 = vperm.xlu1 %1573, %v58_v17   ;;  %115 = vperm.xlu0 %1572, %v57_v18  }
  0x17   :  { %1499 = vmatmul.mubr.msk.bf16.gmra.mrb[8].mxu0 %vm189_vm0, %v1580_v19 }
  0x18   :  { %1502 = vmatprep.mubr.msk.bf16.mxu0 %vm189_vm0, %v1581_v20 }
  0x1a   :  { %130 = vperm.xlu1 %1573, %v60_v21   ;;  %125 = vperm.xlu0 %1572, %v59_v22  }
  0x1e   :  { %140 = vperm.xlu1 %1573, %v62_v23   ;;  %135 = vperm.xlu0 %1572, %v61_v24  }
  0x1f   :  { %1503 = vmatmul.mubr.msk.bf16.gmra.mrb[12].mxu0 %vm189_vm0, %v1582_v25 }
  0x22   :  { %486 = vperm.xlu1 %1573, %v448_v26   ;;  %481 = vperm.xlu0 %1572, %v447_v27  }
  0x26   :  { %496 = vperm.xlu1 %1573, %v450_v28   ;;  %491 = vperm.xlu0 %1572, %v449_v29  }
  0x2a   :  { %506 = vperm.xlu1 %1573, %v452_v30   ;;  %501 = vperm.xlu0 %1572, %v451_v31  }
  0x2e   :  { %516 = vperm.xlu1 %1573, %v454_v32   ;;  %511 = vperm.xlu0 %1572, %v453_v33  }
  0x2f   :  { %13 = vsyncpa [#allocation4], 0  ;;  %v456_v34 = vld [vmem:[%s2561_s4 + $0x48] sm:$0xff]  ;;  %v455_v35 = vld [vmem:[%s2561_s4 + $0x40] sm:$0xff]  ;;  %s1724_s27 = smov [#allocation3]  }
  0x30   :  { %v458_v36 = vld [vmem:[%s2561_s4 + $0x58] sm:$0xff]  ;;  %v457_v37 = vld [vmem:[%s2561_s4 + $0x50] sm:$0xff]  ;;  %v460_v38 = vld [vmem:[%s2561_s4 + $0x68] sm:$0xff]  ;;  %s1365_s28 = sshll.u32 %s1724_s27, 4  ;;  %s1366_s28 = int_to_ptr.vmem [resolvable:$true] %s1365_s28 }
  0x31   :  { %v459_v39 = vld [vmem:[%s2561_s4 + $0x60] sm:$0xff]  ;;  %v462_v40 = vld [vmem:[%s2561_s4 + $0x78] sm:$0xff]  ;;  %v461_v41 = vld [vmem:[%s2561_s4 + $0x70] sm:$0xff]  ;;  %s1699_s29 = scalar_lea.vmem %s1366_s28, 16  ;;  %s1703_s30 = scalar_lea.vmem %s1366_s28, 32 }
  0x32   :  { %526 = vperm.xlu1 %1573, %v456_v34   ;;  %521 = vperm.xlu0 %1572, %v455_v35   ;;  %v464_v42 = vld [vmem:[%s2561_s4 + $0x88] sm:$0xff]  ;;  %v463_v43 = vld [vmem:[%s2561_s4 + $0x80] sm:$0xff]  ;;  %v466_v44 = vld [vmem:[%s2561_s4 + $0x98] sm:$0xff]  ;;  %p1700_p0 = scmp.ne.s32.totalorder %s1366_s28, %s1699_s29  ;;  %p1704_p1 = scmp.lt.s32.totalorder %s1366_s28, %s1366_s28 }
  0x33   :  { %v465_v45 = vld [vmem:[%s2561_s4 + $0x90] sm:$0xff]  ;;  %v468_v46 = vld [vmem:[%s2561_s4 + $0xa8] sm:$0xff]  ;;  %v467_v47 = vld [vmem:[%s2561_s4 + $0xa0] sm:$0xff]  ;;  %p1705_p2 = scmp.lt.s32.totalorder %s1703_s30, %s1699_s29 }
  0x34   :  { %v1089_v48 = vld [vmem:[%s2562_s5 + $0x8] sm:$0xff]  ;;  %v1088_v49 = vld [vmem:[%s2562_s5] sm:$0xff]  ;;  %v1091_v50 = vld [vmem:[%s2562_s5 + $0x18] sm:$0xff] }
  0x35   :  { %v1090_v51 = vld [vmem:[%s2562_s5 + $0x10] sm:$0xff]  ;;  %v1093_v52 = vld [vmem:[%s2562_s5 + $0x28] sm:$0xff]  ;;  %v1092_v53 = vld [vmem:[%s2562_s5 + $0x20] sm:$0xff]  ;;  %p1706_p3 = por %p1705_p2, %p1704_p1 }
  0x36   :  { %536 = vperm.xlu1 %1573, %v458_v36   ;;  %531 = vperm.xlu0 %1572, %v457_v37   ;;  %v1095_v54 = vld [vmem:[%s2562_s5 + $0x38] sm:$0xff]  ;;  %v1094_v55 = vld [vmem:[%s2562_s5 + $0x30] sm:$0xff]  ;;  %v1097_v56 = vld [vmem:[%s2562_s5 + $0x48] sm:$0xff] }
  0x37   :  { %v1096_v57 = vld [vmem:[%s2562_s5 + $0x40] sm:$0xff]  ;;  %v1099_v58 = vld [vmem:[%s2562_s5 + $0x58] sm:$0xff]  ;;  %v1098_v59 = vld [vmem:[%s2562_s5 + $0x50] sm:$0xff]  ;;  %p1707_p4 = pnand %p1706_p3, %p1700_p0 }
  0x38   :  { %v1100_v60 = vld [vmem:[%s2562_s5 + $0x60] sm:$0xff]  ;;  %v469_v61 = vld [vmem:[%s2561_s4 + $0xb0] sm:$0xff]  ;;  %v1101_v62 = vld [vmem:[%s2562_s5 + $0x68] sm:$0xff] }
  0x39   :  { %v470_v63 = vld [vmem:[%s2561_s4 + $0xb8] sm:$0xff]  ;;  %v1102_v0 = vld [vmem:[%s2562_s5 + $0x70] sm:$0xff]  ;;  %v471_v1 = vld [vmem:[%s2561_s4 + $0xc0] sm:$0xff] }
  0x3a   :  { %546 = vperm.xlu1 %1573, %v460_v38   ;;  %541 = vperm.xlu0 %1572, %v459_v39   ;;  %v1103_v2 = vld [vmem:[%s2562_s5 + $0x78] sm:$0xff]  ;;  %v472_v3 = vld [vmem:[%s2561_s4 + $0xc8] sm:$0xff]  ;;  %v1104_v4 = vld [vmem:[%s2562_s5 + $0x80] sm:$0xff] }
  0x3b   :  { %v473_v5 = vld [vmem:[%s2561_s4 + $0xd0] sm:$0xff]  ;;  %v1105_v6 = vld [vmem:[%s2562_s5 + $0x88] sm:$0xff]  ;;  %v474_v7 = vld [vmem:[%s2561_s4 + $0xd8] sm:$0xff] }
  0x3c   :  { %v1106_v8 = vld [vmem:[%s2562_s5 + $0x90] sm:$0xff]  ;;  %v475_v9 = vld [vmem:[%s2561_s4 + $0xe0] sm:$0xff]  ;;  %v1107_v10 = vld [vmem:[%s2562_s5 + $0x98] sm:$0xff] }
  0x3d   :  { %v476_v11 = vld [vmem:[%s2561_s4 + $0xe8] sm:$0xff]  ;;  %v1108_v12 = vld [vmem:[%s2562_s5 + $0xa0] sm:$0xff]  ;;  %v477_v13 = vld [vmem:[%s2561_s4 + $0xf0] sm:$0xff] }
  0x3e   :  { %556 = vperm.xlu1 %1573, %v462_v40   ;;  %551 = vperm.xlu0 %1572, %v461_v41   ;;  %v1109_v14 = vld [vmem:[%s2562_s5 + $0xa8] sm:$0xff]  ;;  %v478_v15 = vld [vmem:[%s2561_s4 + $0xf8] sm:$0xff]  ;;  %v1110_v17 = vld [vmem:[%s2562_s5 + $0xb0] sm:$0xff] }
  0x3f   :  { %v1111_v16 = vld [vmem:[%s2562_s5 + $0xb8] sm:$0xff]  ;;  %v1113_v18 = vld [vmem:[%s2562_s5 + $0xc8] sm:$0xff]  ;;  %v1112_v19 = vld [vmem:[%s2562_s5 + $0xc0] sm:$0xff] }
  0x40   :  { %v1115_v20 = vld [vmem:[%s2562_s5 + $0xd8] sm:$0xff]  ;;  %v1114_v21 = vld [vmem:[%s2562_s5 + $0xd0] sm:$0xff]  ;;  %v1583_v22 = vld [vmem:[%s2560_s3] sm:$0xff]  }
  0x41   :  { %v1584_v23 = vld [vmem:[%s2560_s3 + $0x30] sm:$0xff]   ;;  %v1117_v24 = vld [vmem:[%s2562_s5 + $0xe8] sm:$0xff]  ;;  %v1116_v25 = vld [vmem:[%s2562_s5 + $0xe0] sm:$0xff]  ;;  %1522 = vmatprep.mubr.bf16.mxu0 %v1583_v22 }
  0x42   :  { %566 = vperm.xlu1 %1573, %v464_v42   ;;  %561 = vperm.xlu0 %1572, %v463_v43   ;;  %v1119_v26 = vld [vmem:[%s2562_s5 + $0xf8] sm:$0xff]  ;;  %v1118_v27 = vld [vmem:[%s2562_s5 + $0xf0] sm:$0xff] }
  0x43   :  { %1534 = vmatprep.mubr.bf16.mxu1 %v1584_v23 }
  0x46   :  { %576 = vperm.xlu1 %1573, %v466_v44   ;;  %571 = vperm.xlu0 %1572, %v465_v45  }
  0x4a   :  { %586 = vperm.xlu1 %1573, %v468_v46   ;;  %581 = vperm.xlu0 %1572, %v467_v47  }
  0x4e   :  { %1127 = vperm.xlu1 %1573, %v1089_v48   ;;  %1122 = vperm.xlu0 %1572, %v1088_v49  }
  0x52   :  { %1137 = vperm.xlu1 %1573, %v1091_v50   ;;  %1132 = vperm.xlu0 %1572, %v1090_v51  }
  0x56   :  { %1147 = vperm.xlu1 %1573, %v1093_v52   ;;  %1142 = vperm.xlu0 %1572, %v1092_v53  }
  0x5a   :  { %1157 = vperm.xlu1 %1573, %v1095_v54   ;;  %1152 = vperm.xlu0 %1572, %v1094_v55  }
  0x5e   :  { %1167 = vperm.xlu1 %1573, %v1097_v56   ;;  %1162 = vperm.xlu0 %1572, %v1096_v57  }
  0x62   :  { %1177 = vperm.xlu1 %1573, %v1099_v58   ;;  %1172 = vperm.xlu0 %1572, %v1098_v59  }
  0x66   :  { %1182 = vperm.xlu1 %1573, %v1100_v60   ;;  %591 = vperm.xlu0 %1572, %v469_v61  }
  0x6a   :  { %1187 = vperm.xlu1 %1573, %v1101_v62   ;;  %596 = vperm.xlu0 %1572, %v470_v63  }
  0x6e   :  { %1192 = vperm.xlu1 %1573, %v1102_v0   ;;  %601 = vperm.xlu0 %1572, %v471_v1  }
  0x72   :  { %1197 = vperm.xlu1 %1573, %v1103_v2   ;;  %606 = vperm.xlu0 %1572, %v472_v3  }
  0x76   :  { %1202 = vperm.xlu1 %1573, %v1104_v4   ;;  %611 = vperm.xlu0 %1572, %v473_v5  }
  0x7a   :  { %1207 = vperm.xlu1 %1573, %v1105_v6   ;;  %616 = vperm.xlu0 %1572, %v474_v7  }
  0x7e   :  { %1212 = vperm.xlu1 %1573, %v1106_v8   ;;  %621 = vperm.xlu0 %1572, %v475_v9  }
  0x81   :  { %v66_v28 = vpop.permute.xlu0 %65  ;;  %v76_v29 = vpop.permute.xlu1 %75 }
  0x82   :  { %1217 = vperm.xlu1 %1573, %v1107_v10   ;;  %626 = vperm.xlu0 %1572, %v476_v11  }
  0x85   :  { %v71_v30 = vpop.permute.xlu0 %70  ;;  %v81_v31 = vpop.permute.xlu1 %80 }
  0x86   :  { %1222 = vperm.xlu1 %1573, %v1108_v12   ;;  %631 = vperm.xlu0 %1572, %v477_v13  }
  0x89   :  { %v86_v32 = vpop.permute.xlu0 %85  ;;  %v91_v33 = vpop.permute.xlu1 %90 }
  0x8a   :  { %1227 = vperm.xlu1 %1573, %v1109_v14   ;;  %636 = vperm.xlu0 %1572, %v478_v15  }
  0x8d   :  { %v96_v34 = vpop.permute.xlu0 %95  ;;  %v101_v42 = vpop.permute.xlu1 %100 }
  0x8e   :  { %1237 = vperm.xlu1 %1573, %v1111_v16   ;;  %1232 = vperm.xlu0 %1572, %v1110_v17  }
  0x91   :  { %v106_v48 = vpop.permute.xlu0 %105  ;;  %v111_v56 = vpop.permute.xlu1 %110 }
  0x92   :  { %1247 = vperm.xlu1 %1573, %v1113_v18   ;;  %1242 = vperm.xlu0 %1572, %v1112_v19  }
  0x95   :  { %v116_v61 = vpop.permute.xlu0 %115  ;;  %v121_v6 = vpop.permute.xlu1 %120 }
  0x96   :  { %1257 = vperm.xlu1 %1573, %v1115_v20   ;;  %1252 = vperm.xlu0 %1572, %v1114_v21  }
  0x99   :  { %v126_v13 = vpop.permute.xlu0 %125 }
  0x9a   :  { %1267 = vperm.xlu1 %1573, %v1117_v24   ;;  %1262 = vperm.xlu0 %1572, %v1116_v25  }
  0x9e   :  { %1277 = vperm.xlu1 %1573, %v1119_v26   ;;  %1272 = vperm.xlu0 %1572, %v1118_v27   ;;  %v131_v27 = vpop.permute.xlu1 %130 }
  0xda   :  { %v1492_v35 = vpop.f32.mrb[0].mxu0 }
  0xdb   :  { %v2046_v36 = vadd.f32 %v1492_v35, %v76_v29  ;;  %v248_v37 = vpop.f32.mrb[1].mxu0 }
  0xdc   :  { %v2048_v38 = vadd.f32 %v248_v37, %v66_v28  ;;  %v1493_v39 = vpop.f32.mrb[2].mxu0 }
  0xdd   :  { %v329_v40 = vmin.f32 %v2046_v36, 0.0  ;;  %v2051_v41 = vadd.f32 %v1493_v39, %v81_v31  ;;  %v251_v44 = vpop.f32.mrb[3].mxu0  ;;  %vm313_vm1 = vcmp.gt.f32.partialorder %v2046_v36, 0.0 }
  0xde   :  { %v327_v43 = vmin.f32 %v2048_v38, 0.0  ;;  %v2055_v47 = vadd.f32 %v251_v44, %v71_v30  ;;  %vm311_vm2 = vcmp.gt.f32.partialorder %v2048_v38, 0.0 }
  0xdf   :  { %v347_v45 = vmul.f32 1.442695, %v329_v40  ;;  %v330_v46 = vmin.f32 %v2051_v41, 0.0  ;;  %vm314_vm3 = vcmp.gt.f32.partialorder %v2051_v41, 0.0 }
  0xe0   :  { %v343_v49 = vmul.f32 1.442695, %v327_v43  ;;  %v328_v51 = vmin.f32 %v2055_v47, 0.0  ;;  %vm312_vm4 = vcmp.gt.f32.partialorder %v2055_v47, 0.0 }
  0xe1   :  { %1599 = vpow2.f32 %v347_v45  ;;  %v349_v50 = vmul.f32 1.442695, %v330_v46 }
  0xe2   :  { %1601 = vpow2.f32 %v343_v49  ;;  %v1496_v52 = vpop.f32.mrb[4].mxu0  ;;  %v345_v53 = vmul.f32 1.442695, %v328_v51 }
  0xe3   :  { %1603 = vpow2.f32 %v349_v50  ;;  %v2058_v54 = vadd.f32 %v1496_v52, %v96_v34  ;;  %v264_v55 = vpop.f32.mrb[5].mxu0  ;;  %v136_v34 = vpop.permute.xlu0 %135 }
  0xe4   :  { %v2060_v57 = vadd.f32 %v264_v55, %v86_v32  ;;  %v1497_v58 = vpop.f32.mrb[6].mxu0  ;;  %1605 = vpow2.f32 %v345_v53  ;;  %v141_v52 = vpop.permute.xlu1 %140 }
  0xe5   :  { %v333_v59 = vmin.f32 %v2058_v54, 0.0  ;;  %v2063_v60 = vadd.f32 %v1497_v58, %v101_v42  ;;  %v267_v63 = vpop.f32.mrb[7].mxu0  ;;  %vm317_vm5 = vcmp.gt.f32.partialorder %v2058_v54, 0.0 }
  0xe6   :  { %v331_v62 = vmin.f32 %v2060_v57, 0.0  ;;  %v2067_v2 = vadd.f32 %v267_v63, %v91_v33  ;;  %vm315_vm6 = vcmp.gt.f32.partialorder %v2060_v57, 0.0 }
  0xe7   :  { %v355_v0 = vmul.f32 1.442695, %v333_v59  ;;  %v334_v1 = vmin.f32 %v2063_v60, 0.0  ;;  %vm318_vm7 = vcmp.gt.f32.partialorder %v2063_v60, 0.0 }
  0xe8   :  { %v351_v3 = vmul.f32 1.442695, %v331_v62  ;;  %v332_v5 = vmin.f32 %v2067_v2, 0.0  ;;  %vm316_vm8 = vcmp.gt.f32.partialorder %v2067_v2, 0.0 }
  0xe9   :  { %1607 = vpow2.f32 %v355_v0  ;;  %v357_v4 = vmul.f32 1.442695, %v334_v1 }
  0xea   :  { %1609 = vpow2.f32 %v351_v3  ;;  %v1500_v7 = vpop.f32.mrb[8].mxu0  ;;  %v353_v9 = vmul.f32 1.442695, %v332_v5 }
  0xeb   :  { %v1600_v8 = vpop.eup %1599  ;;  %1611 = vpow2.f32 %v357_v4  ;;  %v2070_v10 = vadd.f32 %v1500_v7, %v116_v61  ;;  %v280_v11 = vpop.f32.mrb[9].mxu0 }
  0xec   :  { %v1602_v12 = vpop.eup %1601  ;;  %v1392_v14 = vadd.f32 -1.0, %v1600_v8  ;;  %v2072_v15 = vadd.f32 %v280_v11, %v106_v48  ;;  %v1501_v16 = vpop.f32.mrb[10].mxu0  ;;  %1613 = vpow2.f32 %v353_v9 }
  0xed   :  { %v1604_v17 = vpop.eup %1603  ;;  %v337_v18 = vmin.f32 %v2070_v10, 0.0  ;;  %v1390_v19 = vadd.f32 -1.0, %v1602_v12  ;;  %v283_v22 = vpop.f32.mrb[11].mxu0  ;;  %v2079_v25 = vadd.f32 %v1501_v16, %v121_v6  ;;  %vm321_vm9 = vcmp.gt.f32.partialorder %v2070_v10, 0.0 }
  0xee   :  { %v1393_v20 = vadd.f32 -1.0, %v1604_v17  ;;  %v335_v21 = vmin.f32 %v2072_v15, 0.0  ;;  %v1606_v23 = vpop.eup %1605  ;;  %v2081_v26 = vadd.f32 %v283_v22, %v111_v56  ;;  %v393_v28 = vsel %vm313_vm1, %v2046_v36, %v1392_v14 }
  0xef   :  { %v363_v24 = vmul.f32 1.442695, %v337_v18  ;;  %v1391_v30 = vadd.f32 -1.0, %v1606_v23  ;;  %v338_v33 = vmin.f32 %v2079_v25, 0.0  ;;  %v391_v35 = vsel %vm311_vm2, %v2048_v38, %v1390_v19 }
  0xf0   :  { %v394_v29 = vsel %vm314_vm3, %v2051_v41, %v1393_v20  ;;  %v359_v31 = vmul.f32 1.442695, %v335_v21  ;;  %v336_v36 = vmin.f32 %v2081_v26, 0.0  ;;  %vm322_vm10 = vcmp.gt.f32.partialorder %v2079_v25, 0.0 }
  0xf1   :  { %v440_v32 = vpack.c.bf16 %v394_v29, %v393_v28  ;;  %1615 = vpow2.f32 %v363_v24  ;;  %v392_v37 = vsel %vm312_vm4, %v2055_v47, %v1391_v30  ;;  %v365_v42 = vmul.f32 1.442695, %v338_v33 }
  0xf2   :  { %1617 = vpow2.f32 %v359_v31  ;;  %v1504_v39 = vpop.f32.mrb[12].mxu0  ;;  %v439_v41 = vpack.c.bf16 %v392_v37, %v391_v35  ;;  %v361_v48 = vmul.f32 1.442695, %v336_v36  ;;  %vm319_vm11 = vcmp.gt.f32.partialorder %v2072_v15, 0.0  ;;  %v1585_v37 = vld [vmem:[%s2560_s3 + $0x8] sm:$0xff]   ;;  %v1586_v36 = vld [vmem:[%s2560_s3 + $0x38] sm:$0xff]  }
  0xf3   :  { %v1608_v40 = vpop.eup %1607  ;;  %v2092_v43 = vadd.f32 %v1504_v39, %v136_v34  ;;  %v296_v44 = vpop.f32.mrb[13].mxu0  ;;  %1619 = vpow2.f32 %v365_v42  ;;  %vm320_vm12 = vcmp.gt.f32.partialorder %v2081_v26, 0.0  ;;  %v1587_v39 = vld [vmem:[%s2560_s3 + $0x10] sm:$0xff]   ;;  %v1590_v42 = vld [vmem:[%s2560_s3 + $0x48] sm:$0xff]  }
  0xf4   :  { %v1610_v45 = vpop.eup %1609  ;;  %v1396_v46 = vadd.f32 -1.0, %v1608_v40  ;;  %v2094_v49 = vadd.f32 %v296_v44, %v126_v13  ;;  %v1505_v50 = vpop.f32.mrb[14].mxu0  ;;  %1506 = vmatprep.subr.bf16.mxu0 %v439_v41  ;;  %1554 = vmatprep.subr.bf16.mxu1 %v439_v41  ;;  %1621 = vpow2.f32 %v361_v48  ;;  %v1588_v40 = vld [vmem:[%s2560_s3 + $0x40] sm:$0xff]   ;;  %v1592_v44 = vld [vmem:[%s2560_s3 + $0x50] sm:$0xff]  }
  0xf5   :  { %v1612_v51 = vpop.eup %1611  ;;  %v1394_v38 = vadd.f32 -1.0, %v1610_v45  ;;  %v341_v47 = vmin.f32 %v2092_v43, 0.0  ;;  %v299_v55 = vpop.f32.mrb[15].mxu0  ;;  %1507 = vmatpush3.bf16.msra.mxu0 %v439_v41  ;;  %1562 = vmatpush3.bf16.msra.mxu1 %v439_v41  ;;  %v2101_v61 = vadd.f32 %v1505_v50, %v141_v52  ;;  %vm325_vm13 = vcmp.gt.f32.partialorder %v2092_v43, 0.0  ;;  %v1589_v41 = vld [vmem:[%s2560_s3 + $0x18] sm:$0xff]   ;;  %v1593_v45 = vld [vmem:[%s2560_s3 + $0x28] sm:$0xff]  }
  0xf6   :  { %v1397_v53 = vadd.f32 -1.0, %v1612_v51  ;;  %v1614_v56 = vpop.eup %1613  ;;  %v339_v59 = vmin.f32 %v2094_v49, 0.0  ;;  %1508 = vmatprep.subr.bf16.mxu0 %v440_v32  ;;  %1555 = vmatprep.subr.bf16.mxu1 %v440_v32  ;;  %v397_v62 = vsel %vm317_vm5, %v2058_v54, %v1396_v46  ;;  %v2105_v1 = vadd.f32 %v299_v55, %v131_v27  ;;  %v1594_v46 = vld [vmem:[%s2560_s3 + $0x58] sm:$0xff]   ;;  %v1595_v48 = vld [vmem:[%s2560_s3 + $0x60] sm:$0xff]   ;;  %v1597_v50 = vld [vmem:[%s2560_s3 + $0x70] sm:$0xff]  }
  0xf7   :  { %v371_v58 = vmul.f32 1.442695, %v341_v47  ;;  %v1395_v0 = vadd.f32 -1.0, %v1614_v56  ;;  %v395_v3 = vsel %vm315_vm6, %v2060_v57, %v1394_v38  ;;  %v342_v7 = vmin.f32 %v2101_v61, 0.0  ;;  %v1598_v51 = vld [vmem:[%s2560_s3 + $0x78] sm:$0xff]   ;;  %v487_v38 = vpop.permute.xlu1 %486  ;;  %v482_v47 = vpop.permute.xlu0 %481 }
  0xf8   :  { %v398_v63 = vsel %vm318_vm7, %v2063_v60, %v1397_v53  ;;  %v367_v5 = vmul.f32 1.442695, %v339_v59  ;;  %v340_v54 = vmin.f32 %v2105_v1, 0.0  ;;  %vm326_vm14 = vcmp.gt.f32.partialorder %v2101_v61, 0.0 }
  0xf9   :  { %v442_v4 = vpack.c.bf16 %v398_v63, %v397_v62  ;;  %v396_v6 = vsel %vm316_vm8, %v2067_v2, %v1395_v0  ;;  %1623 = vpow2.f32 %v371_v58  ;;  %1509 = vmatpush3.bf16.msra.mxu0 %v440_v32  ;;  %1563 = vmatpush3.bf16.msra.mxu1 %v440_v32  ;;  %v373_v11 = vmul.f32 1.442695, %v342_v7 }
  0xfa   :  { %v441_v8 = vpack.c.bf16 %v396_v6, %v395_v3  ;;  %1625 = vpow2.f32 %v367_v5  ;;  %v369_v12 = vmul.f32 1.442695, %v340_v54  ;;  %vm323_vm15 = vcmp.gt.f32.partialorder %v2094_v49, 0.0 }
  0xfb   :  { %v1616_v60 = vpop.eup %1615  ;;  %1627 = vpow2.f32 %v373_v11  ;;  %vm324_vm0 = vcmp.gt.f32.partialorder %v2105_v1, 0.0  ;;  %v497_v52 = vpop.permute.xlu1 %496 }
  0xfc   :  { %v1618_v9 = vpop.eup %1617  ;;  %1510 = vmatprep.subr.bf16.mxu0 %v441_v8  ;;  %1556 = vmatprep.subr.bf16.mxu1 %v441_v8  ;;  %v1400_v57 = vadd.f32 -1.0, %v1616_v60  ;;  %1629 = vpow2.f32 %v369_v12  ;;  %v492_v53 = vpop.permute.xlu0 %491 }
  0xfd   :  { %1511 = vmatpush3.bf16.msra.mxu0 %v441_v8  ;;  %1564 = vmatpush3.bf16.msra.mxu1 %v441_v8  ;;  %v1620_v2 = vpop.eup %1619  ;;  %v1398_v13 = vadd.f32 -1.0, %v1618_v9 }
  0xfe   :  { %1512 = vmatprep.subr.bf16.mxu0 %v442_v4  ;;  %1557 = vmatprep.subr.bf16.mxu1 %v442_v4  ;;  %v1622_v14 = vpop.eup %1621  ;;  %v1401_v16 = vadd.f32 -1.0, %v1620_v2  ;;  %v401_v18 = vsel %vm321_vm9, %v2070_v10, %v1400_v57 }
  0xff   :  { %v1399_v17 = vadd.f32 -1.0, %v1622_v14  ;;  %v399_v20 = vsel %vm319_vm11, %v2072_v15, %v1398_v13  ;;  %v2172_v55 = vpop.permute.xlu1 %506 }
 0x100   :  { %v402_v19 = vsel %vm322_vm10, %v2079_v25, %v1401_v16  ;;  %v502_v56 = vpop.permute.xlu0 %501 }
 0x101   :  { %1513 = vmatpush3.bf16.msra.mxu0 %v442_v4  ;;  %1565 = vmatpush3.bf16.msra.mxu1 %v442_v4  ;;  %v444_v21 = vpack.c.bf16 %v402_v19, %v401_v18  ;;  %v400_v22 = vsel %vm320_vm12, %v2081_v26, %v1399_v17 }
 0x102   :  { %v443_v24 = vpack.c.bf16 %v400_v22, %v399_v20 }
 0x103   :  { %v1624_v23 = vpop.eup %1623  ;;  %v2174_v58 = vpop.permute.xlu1 %516 }
 0x104   :  { %v1626_v27 = vpop.eup %1625  ;;  %1514 = vmatprep.subr.bf16.mxu0 %v443_v24  ;;  %1558 = vmatprep.subr.bf16.mxu1 %v443_v24  ;;  %v1404_v28 = vadd.f32 -1.0, %v1624_v23  ;;  %v512_v59 = vpop.permute.xlu0 %511 }
 0x105   :  { %1515 = vmatpush3.bf16.msra.mxu0 %v443_v24  ;;  %1566 = vmatpush3.bf16.msra.mxu1 %v443_v24  ;;  %v1628_v10 = vpop.eup %1627  ;;  %v1402_v29 = vadd.f32 -1.0, %v1626_v27 }
 0x106   :  { %1516 = vmatprep.subr.bf16.mxu0 %v444_v21  ;;  %1559 = vmatprep.subr.bf16.mxu1 %v444_v21  ;;  %v1630_v25 = vpop.eup %1629  ;;  %v1405_v30 = vadd.f32 -1.0, %v1628_v10  ;;  %v405_v26 = vsel %vm325_vm13, %v2092_v43, %v1404_v28  ;;  %v1591_v43 = vld [vmem:[%s2560_s3 + $0x20] sm:$0xff]  }
 0x107   :  { %v1403_v15 = vadd.f32 -1.0, %v1630_v25  ;;  %v403_v32 = vsel %vm323_vm15, %v2094_v49, %v1402_v29  ;;  %v1596_v49 = vld [vmem:[%s2560_s3 + $0x68] sm:$0xff]  }
 0x108   :  { %v406_v31 = vsel %vm326_vm14, %v2101_v61, %v1405_v30  ;;  %v2176_v61 = vpop.permute.xlu1 %526  ;;  %v2178_v62 = vpop.permute.xlu0 %521 }
 0x109   :  { %1517 = vmatpush3.bf16.msra.mxu0 %v444_v21  ;;  %1567 = vmatpush3.bf16.msra.mxu1 %v444_v21  ;;  %v446_v33 = vpack.c.bf16 %v406_v31, %v405_v26  ;;  %v404_v34 = vsel %vm324_vm0, %v2105_v1, %v1403_v15 }
 0x10a   :  { %v445_v35 = vpack.c.bf16 %v404_v34, %v403_v32 }
 0x10c   :  { %1518 = vmatprep.subr.bf16.mxu0 %v445_v35  ;;  %1560 = vmatprep.subr.bf16.mxu1 %v445_v35  ;;  %v2180_v63 = vpop.permute.xlu1 %536  ;;  %v2182_v0 = vpop.permute.xlu0 %531 }
 0x10d   :  { %1519 = vmatpush3.bf16.msra.mxu0 %v445_v35  ;;  %1568 = vmatpush3.bf16.msra.mxu1 %v445_v35 }
 0x10e   :  { %1520 = vmatprep.subr.bf16.mxu0 %v446_v33  ;;  %1561 = vmatprep.subr.bf16.mxu1 %v446_v33 }
 0x110   :  { %v2184_v1 = vpop.permute.xlu1 %546  ;;  %v2186_v3 = vpop.permute.xlu0 %541 }
 0x111   :  { %1521 = vmatpush3.bf16.msra.mxu0 %v446_v33  ;;  %1569 = vmatpush3.bf16.msra.mxu1 %v446_v33 }
 0x114   :  { %1523 = vmatmul.mubr.bf16.vlgmr.msra.gmra.mrb[16].mxu0 %v1585_v37  ;;  %1535 = vmatmul.mubr.bf16.vlgmr.msra.gmra.mrb[0].mxu1 %v1586_v36  ;;  %v2188_v4 = vpop.permute.xlu1 %556  ;;  %v2190_v5 = vpop.permute.xlu0 %551 }
 0x115   :  { %1526 = vmatprep.mubr.bf16.mxu0 %v1587_v39  ;;  %1538 = vmatprep.mubr.bf16.mxu1 %v1588_v40 }
 0x118   :  { %v2192_v6 = vpop.permute.xlu1 %566  ;;  %v2194_v7 = vpop.permute.xlu0 %561 }
 0x11c   :  { %1527 = vmatmul.mubr.bf16.gmra.mrb[20].mxu0 %v1589_v41  ;;  %1539 = vmatmul.mubr.bf16.gmra.mrb[4].mxu1 %v1590_v42  ;;  %v2196_v54 = vpop.permute.xlu1 %576  ;;  %v2198_v60 = vpop.permute.xlu0 %571 }
 0x11d   :  { %1530 = vmatprep.mubr.bf16.mxu0 %v1591_v43  ;;  %1542 = vmatprep.mubr.bf16.mxu1 %v1592_v44 }
 0x120   :  { %v2200_v8 = vpop.permute.xlu1 %586  ;;  %v2202_v9 = vpop.permute.xlu0 %581 }
 0x124   :  { %1531 = vmatmul.mubr.bf16.gmra.mrb[24].mxu0 %v1593_v45  ;;  %1543 = vmatmul.mubr.bf16.gmra.mrb[8].mxu1 %v1594_v46  ;;  %v2204_v11 = vpop.permute.xlu1 %1127  ;;  %v2206_v12 = vpop.permute.xlu0 %1122 }
 0x125   :  { %1546 = vmatprep.mubr.bf16.mxu1 %v1595_v48 }
 0x128   :  { %v2208_v57 = vpop.permute.xlu1 %1137  ;;  %v2210_v2 = vpop.permute.xlu0 %1132 }
 0x12c   :  { %1547 = vmatmul.mubr.bf16.gmra.mrb[12].mxu1 %v1596_v49  ;;  %v2212_v13 = vpop.permute.xlu1 %1147  ;;  %v2214_v14 = vpop.permute.xlu0 %1142 }
 0x12d   :  { %1550 = vmatprep.mubr.bf16.mxu1 %v1597_v50 }
 0x130   :  { %v2216_v16 = vpop.permute.xlu1 %1157  ;;  %v2218_v17 = vpop.permute.xlu0 %1152 }
 0x134   :  { %1551 = vmatmul.mubr.bf16.gmra.mrb[16].mxu1 %v1598_v51  ;;  %v2220_v18 = vpop.permute.xlu1 %1167  ;;  %v2222_v19 = vpop.permute.xlu0 %1162 }
 0x135   :  { %2565 = vst [vmem:[#allocation6_spill] sm:$0xff] %v2220_v18 }
 0x138   :  { %v2242_v34 = vpop.permute.xlu1 %1177  ;;  %v2244_v35 = vpop.permute.xlu0 %1172 }
 0x139   :  { %2566 = vst [vmem:[#allocation7_spill] sm:$0xff] %v2242_v34  ;;  %2567 = vst [vmem:[#allocation8_spill] sm:$0xff] %v2244_v35 }
 0x1e7   :  { %v1524_v20 = vpop.f32.mrb[16].mxu0  ;;  %v2224_v21 = vpop.f32.mrb[0].mxu1 }
 0x1e8   :  { %v2226_v22 = vadd.f32 %v1524_v20, %v492_v53  ;;  %v769_v23 = vpop.f32.mrb[17].mxu0  ;;  %v2228_v24 = vpop.f32.mrb[1].mxu1 }
 0x1e9   :  { %v2230_v27 = vadd.f32 %v769_v23, %v482_v47  ;;  %v1525_v28 = vpop.f32.mrb[18].mxu0  ;;  %v2232_v10 = vpop.f32.mrb[2].mxu1 }
 0x1ea   :  { %v930_v29 = vmin.f32 %v2226_v22, 0.0  ;;  %v772_v25 = vpop.f32.mrb[19].mxu0  ;;  %v2235_v30 = vpop.f32.mrb[3].mxu1  ;;  %v2238_v31 = vadd.f32 %v1525_v28, %v497_v52  ;;  %vm898_vm2 = vcmp.gt.f32.partialorder %v2226_v22, 0.0 }
 0x1eb   :  { %v928_v15 = vmin.f32 %v2230_v27, 0.0  ;;  %v2240_v33 = vadd.f32 %v772_v25, %v487_v38  ;;  %v2262_v52 = vpop.permute.xlu1 %1182  ;;  %v2264_v53 = vpop.permute.xlu0 %591  ;;  %vm896_vm1 = vcmp.gt.f32.partialorder %v2230_v27, 0.0 }
 0x1ec   :  { %v964_v26 = vmul.f32 1.442695, %v930_v29  ;;  %v931_v37 = vmin.f32 %v2238_v31, 0.0  ;;  %2568 = vst [vmem:[#allocation9_spill] sm:$0xff] %v2262_v52  ;;  %vm899_vm4 = vcmp.gt.f32.partialorder %v2238_v31, 0.0 }
 0x1ed   :  { %v960_v32 = vmul.f32 1.442695, %v928_v15  ;;  %v929_v36 = vmin.f32 %v2240_v33, 0.0  ;;  %vm897_vm3 = vcmp.gt.f32.partialorder %v2240_v33, 0.0 }
 0x1ee   :  { %1631 = vpow2.f32 %v964_v26  ;;  %v966_v41 = vmul.f32 1.442695, %v931_v37 }
 0x1ef   :  { %v1528_v39 = vpop.f32.mrb[20].mxu0  ;;  %v2248_v40 = vpop.f32.mrb[4].mxu1  ;;  %1633 = vpow2.f32 %v960_v32  ;;  %v962_v44 = vmul.f32 1.442695, %v929_v36 }
 0x1f0   :  { %v785_v42 = vpop.f32.mrb[21].mxu0  ;;  %v2250_v43 = vpop.f32.mrb[5].mxu1  ;;  %v2252_v45 = vadd.f32 %v1528_v39, %v512_v59  ;;  %1635 = vpow2.f32 %v966_v41 }
 0x1f1   :  { %v1529_v46 = vpop.f32.mrb[22].mxu0  ;;  %v2254_v48 = vpop.f32.mrb[6].mxu1  ;;  %v2256_v49 = vadd.f32 %v785_v42, %v502_v56  ;;  %1637 = vpow2.f32 %v962_v44 }
 0x1f2   :  { %v788_v50 = vpop.f32.mrb[23].mxu0  ;;  %v2258_v51 = vpop.f32.mrb[7].mxu1  ;;  %v934_v38 = vmin.f32 %v2252_v45, 0.0  ;;  %v2267_v59 = vadd.f32 %v1529_v46, %v2174_v58  ;;  %vm902_vm6 = vcmp.gt.f32.partialorder %v2252_v45, 0.0 }
 0x1f3   :  { %v932_v47 = vmin.f32 %v2256_v49, 0.0  ;;  %v2270_v23 = vadd.f32 %v788_v50, %v2172_v55  ;;  %v2296_v18 = vpop.permute.xlu1 %1187  ;;  %vm900_vm5 = vcmp.gt.f32.partialorder %v2256_v49, 0.0 }
 0x1f4   :  { %v972_v29 = vmul.f32 1.442695, %v934_v38  ;;  %v935_v25 = vmin.f32 %v2267_v59, 0.0  ;;  %vm903_vm8 = vcmp.gt.f32.partialorder %v2267_v59, 0.0 }
 0x1f5   :  { %v968_v20 = vmul.f32 1.442695, %v932_v47  ;;  %v933_v44 = vmin.f32 %v2270_v23, 0.0  ;;  %v2286_v47 = vpop.permute.xlu0 %596  ;;  %vm901_vm7 = vcmp.gt.f32.partialorder %v2270_v23, 0.0 }
 0x1f6   :  { %v974_v39 = vmul.f32 1.442695, %v935_v25  ;;  %v2291_v25 = vadd.f32 %v2224_v21, %v2190_v5 }
 0x1f7   :  { %v1532_v56 = vpop.f32.mrb[24].mxu0  ;;  %v2272_v28 = vpop.f32.mrb[8].mxu1  ;;  %1639 = vpow2.f32 %v968_v20  ;;  %v970_v20 = vmul.f32 1.442695, %v933_v44 }
 0x1f8   :  { %v801_v15 = vpop.f32.mrb[25].mxu0  ;;  %v2275_v26 = vpop.f32.mrb[9].mxu1  ;;  %1641 = vpow2.f32 %v972_v29  ;;  %vm910_vm9 = vcmp.gt.f32.partialorder %v2291_v25, 0.0 }
 0x1f9   :  { %v1632_v32 = vpop.eup %1631  ;;  %v2277_v37 = vpop.f32.mrb[26].mxu0  ;;  %1643 = vpow2.f32 %v974_v39 }
 0x1fa   :  { %v2279_v36 = vpop.f32.mrb[10].mxu1  ;;  %v1634_v58 = vpop.eup %1633  ;;  %v1424_v50 = vadd.f32 -1.0, %v1632_v32  ;;  %1645 = vpow2.f32 %v970_v20 }
 0x1fb   :  { %v2281_v41 = vpop.f32.mrb[27].mxu0  ;;  %v2283_v55 = vpop.f32.mrb[11].mxu1  ;;  %v1422_v42 = vadd.f32 -1.0, %v1634_v58 }
 0x1fc   :  { %v1636_v46 = vpop.eup %1635  ;;  %v1058_v32 = vsel %vm898_vm2, %v2226_v22, %v1424_v50 }
 0x1fd   :  { %v1638_v38 = vpop.eup %1637  ;;  %v1056_v52 = vsel %vm896_vm1, %v2230_v27, %v1422_v42  ;;  %v1425_v34 = vadd.f32 -1.0, %v1636_v46  ;;  %v942_v46 = vmin.f32 %v2291_v25, 0.0  ;;  %v1282_v50 = vmul.f32 %v2210_v2, %v1058_v32 }
 0x1fe   :  { %v1423_v58 = vadd.f32 -1.0, %v1638_v38  ;;  %v1280_v27 = vmul.f32 %v2206_v12, %v1056_v52  ;;  %v2314_v38 = vadd.f32 %v2228_v24, %v2186_v3 }
 0x1ff   :  { %v2294_v35 = vpop.f32.mrb[12].mxu1  ;;  %v1059_v22 = vsel %vm899_vm4, %v2238_v31, %v1425_v34  ;;  %v988_v31 = vmul.f32 1.442695, %v942_v46 }
 0x200   :  { %v2300_v29 = vpop.f32.mrb[13].mxu1  ;;  %v1057_v5 = vsel %vm897_vm3, %v2240_v33, %v1423_v58  ;;  %v2317_v33 = vpop.permute.xlu0 %601  ;;  %v940_v34 = vmin.f32 %v2314_v38, 0.0  ;;  %vm908_vm10 = vcmp.gt.f32.partialorder %v2314_v38, 0.0 }
 0x201   :  { %v2304_v21 = vpop.f32.mrb[14].mxu1  ;;  %v1281_v39 = vmul.f32 %v2204_v11, %v1057_v5  ;;  %v1640_v44 = vpop.eup %1639  ;;  %v2322_v11 = vadd.f32 %v1532_v56, %v2182_v0  ;;  %v1283_v5 = vmul.f32 %v2208_v57, %v1059_v22  ;;  %v2334_v0 = vadd.f32 %v2235_v30, %v2184_v1 }
 0x202   :  { %v2309_v42 = vpop.f32.mrb[15].mxu1  ;;  %v1426_v52 = vadd.f32 -1.0, %v1640_v44  ;;  %v1642_v20 = vpop.eup %1641  ;;  %v2352_v30 = vadd.f32 %v2277_v37, %v2180_v63  ;;  %1647 = vpow2.f32 %v988_v31 }
 0x203   :  { %v1312_v12 = vadd.f32 %v1281_v39, %v1280_v27  ;;  %v2324_v58 = vpop.permute.xlu1 %1192  ;;  %v1644_v27 = vpop.eup %1643  ;;  %v1428_v44 = vadd.f32 -1.0, %v1642_v20  ;;  %v938_v57 = vmin.f32 %v2322_v11, 0.0  ;;  %vm909_vm12 = vcmp.gt.f32.partialorder %v2334_v0, 0.0 }
 0x204   :  { %v1060_v24 = vsel %vm900_vm5, %v2256_v49, %v1426_v52  ;;  %v2340_v49 = vadd.f32 %v801_v15, %v2178_v62  ;;  %v1646_v22 = vpop.eup %1645  ;;  %v984_v52 = vmul.f32 1.442695, %v940_v34  ;;  %v1429_v62 = vadd.f32 -1.0, %v1644_v27 }
 0x205   :  { %v1313_v3 = vadd.f32 %v1312_v12, %v1282_v50  ;;  %v1284_v2 = vmul.f32 %v2214_v14, %v1060_v24  ;;  %v2344_v14 = vpop.permute.xlu0 %606  ;;  %v2348_v50 = vadd.f32 %v2232_v10, %v2188_v4  ;;  %v1427_v15 = vadd.f32 -1.0, %v1646_v22 }
 0x206   :  { %v936_v4 = vmin.f32 %v2340_v49, 0.0  ;;  %v1062_v10 = vsel %vm902_vm6, %v2252_v45, %v1428_v44  ;;  %v980_v37 = vmul.f32 1.442695, %v938_v57  ;;  %v2369_v34 = vadd.f32 %v2281_v41, %v2176_v61 }
 0x207   :  { %v2330_v32 = vpop.f32.mrb[16].mxu1  ;;  %v1314_v56 = vadd.f32 %v1313_v3, %v1283_v5  ;;  %v2356_v20 = vpop.permute.xlu1 %1197  ;;  %v941_v5 = vmin.f32 %v2334_v0, 0.0  ;;  %v1061_v63 = vsel %vm901_vm7, %v2270_v23, %v1427_v15  ;;  %v939_v3 = vmin.f32 %v2352_v30, 0.0 }
 0x208   :  { %v2336_v39 = vpop.f32.mrb[17].mxu1  ;;  %v1285_v24 = vmul.f32 %v2212_v13, %v1061_v63  ;;  %v976_v31 = vmul.f32 1.442695, %v936_v4  ;;  %v1063_v45 = vsel %vm903_vm8, %v2267_v59, %v1429_v62  ;;  %v1286_v44 = vmul.f32 %v2218_v17, %v1062_v10 }
 0x209   :  { %v2342_v46 = vpop.f32.mrb[18].mxu1  ;;  %v1315_v1 = vadd.f32 %v1314_v56, %v1284_v2  ;;  %v2373_v2 = vadd.f32 %v2250_v43, %v2194_v7  ;;  %v982_v27 = vmul.f32 1.442695, %v939_v3  ;;  %v2376_v23 = vpop.permute.xlu0 %611  ;;  %v986_v56 = vmul.f32 1.442695, %v941_v5 }
 0x20a   :  { %v2354_v12 = vpop.f32.mrb[19].mxu1  ;;  %1649 = vpow2.f32 %v976_v31  ;;  %v943_v13 = vmin.f32 %v2348_v50, 0.0  ;;  %v2382_v61 = vadd.f32 %v2258_v51, %v2192_v6  ;;  %v937_v7 = vmin.f32 %v2369_v34, 0.0 }
 0x20b   :  { %v1316_v57 = vadd.f32 %v1315_v1, %v1285_v24  ;;  %1651 = vpow2.f32 %v980_v37  ;;  %v2385_v43 = vpop.permute.xlu1 %1202  ;;  %v2389_v59 = vadd.f32 %v2248_v40, %v2198_v60  ;;  %v1287_v17 = vmul.f32 %v2216_v16, %v1063_v45 }
 0x20c   :  { %1653 = vpow2.f32 %v984_v52  ;;  %v944_v22 = vmin.f32 %v2373_v2, 0.0  ;;  %v2395_v1 = vadd.f32 %v2254_v48, %v2196_v54  ;;  %v978_v6 = vmul.f32 1.442695, %v937_v7  ;;  %v1648_v62 = vpop.eup %1647 }
 0x20d   :  { %v1317_v41 = vadd.f32 %v1316_v57, %v1286_v44  ;;  %1655 = vpow2.f32 %v982_v27  ;;  %v990_v15 = vmul.f32 1.442695, %v943_v13  ;;  %v945_v52 = vmin.f32 %v2382_v61, 0.0  ;;  %v2398_v60 = vpop.permute.xlu0 %616 }
 0x20e   :  { %1657 = vpow2.f32 %v986_v56  ;;  %v946_v16 = vmin.f32 %v2389_v59, 0.0  ;;  %v992_v40 = vmul.f32 1.442695, %v944_v22  ;;  %v947_v5 = vmin.f32 %v2395_v1, 0.0 }
 0x20f   :  { %v1318_v51 = vadd.f32 %v1317_v41, %v1287_v17  ;;  %1659 = vpow2.f32 %v978_v6  ;;  %v2402_v4 = vpop.permute.xlu1 %1207  ;;  %v994_v54 = vmul.f32 1.442695, %v945_v52  ;;  %v2406_v48 = vadd.f32 %v2275_v26, %v2202_v9 }
 0x210   :  { %1661 = vpow2.f32 %v990_v15  ;;  %v1436_v63 = vadd.f32 -1.0, %v1648_v62  ;;  %v996_v37 = vmul.f32 1.442695, %v946_v16  ;;  %v998_v24 = vmul.f32 1.442695, %v947_v5  ;;  %v2569_v5 = vld [vmem:[#allocation6_spill] sm:$0xff] }
 0x211   :  { %1663 = vpow2.f32 %v992_v40  ;;  %v2410_v45 = vadd.f32 %v2283_v55, %v2200_v8  ;;  %v2412_v56 = vpop.permute.xlu0 %621  ;;  %v2418_v9 = vadd.f32 %v2272_v28, %v2264_v53  ;;  %vm904_vm11 = vcmp.gt.f32.partialorder %v2340_v49, 0.0 }
 0x212   :  { %1665 = vpow2.f32 %v994_v54  ;;  %v948_v55 = vmin.f32 %v2406_v48, 0.0  ;;  %v2429_v53 = vadd.f32 %v2279_v36, %v2286_v47  ;;  %v1070_v17 = vsel %vm910_vm9, %v2291_v25, %v1436_v63 }
 0x213   :  { %v2424_v57 = vpop.permute.xlu1 %1212  ;;  %1667 = vpow2.f32 %v996_v37  ;;  %v950_v22 = vmin.f32 %v2418_v9, 0.0  ;;  %vm911_vm13 = vcmp.gt.f32.partialorder %v2348_v50, 0.0  ;;  %vm906_vm14 = vcmp.gt.f32.partialorder %v2322_v11, 0.0 }
 0x214   :  { %v1650_v10 = vpop.eup %1649  ;;  %1669 = vpow2.f32 %v998_v24  ;;  %vm905_vm15 = vcmp.gt.f32.partialorder %v2369_v34, 0.0  ;;  %v2441_v36 = vadd.f32 %v2300_v29, %v2317_v33  ;;  %v951_v16 = vmin.f32 %v2429_v53, 0.0  ;;  %v2570_v24 = vld [vmem:[#allocation8_spill] sm:$0xff] }
 0x215   :  { %v1652_v3 = vpop.eup %1651  ;;  %v1430_v31 = vadd.f32 -1.0, %v1650_v10  ;;  %v627_v47 = vpop.permute.xlu0 %626  ;;  %vm912_vm0 = vcmp.gt.f32.partialorder %v2373_v2, 0.0  ;;  %vm907_vm1 = vcmp.gt.f32.partialorder %v2352_v30, 0.0  ;;  %v2451_v29 = vadd.f32 %v2309_v42, %v2344_v14 }
 0x216   :  { %v1654_v27 = vpop.eup %1653  ;;  %v1432_v13 = vadd.f32 -1.0, %v1652_v3  ;;  %v1004_v63 = vmul.f32 1.442695, %v950_v22  ;;  %v2461_v37 = vadd.f32 %v2294_v35, %v2376_v23  ;;  %v952_v42 = vmin.f32 %v2441_v36, 0.0  ;;  %v2571_v35 = vld [vmem:[#allocation7_spill] sm:$0xff] }
 0x217   :  { %v1656_v26 = vpop.eup %1655  ;;  %v1064_v8 = vsel %vm904_vm11, %v2340_v49, %v1430_v31  ;;  %v1434_v41 = vadd.f32 -1.0, %v1654_v27  ;;  %v949_v49 = vmin.f32 %v2410_v45, 0.0  ;;  %v2453_v33 = vpop.permute.xlu1 %1217  ;;  %vm914_vm2 = vcmp.gt.f32.partialorder %v2389_v59, 0.0 }
 0x218   :  { %v1658_v44 = vpop.eup %1657  ;;  %v1288_v7 = vmul.f32 %v2222_v19, %v1064_v8  ;;  %v1433_v62 = vadd.f32 -1.0, %v1656_v26  ;;  %v1000_v19 = vmul.f32 1.442695, %v948_v55  ;;  %v1066_v52 = vsel %vm906_vm14, %v2322_v11, %v1432_v13 }
 0x219   :  { %v1660_v28 = vpop.eup %1659  ;;  %v1435_v25 = vadd.f32 -1.0, %v1658_v44  ;;  %v1002_v10 = vmul.f32 1.442695, %v949_v49  ;;  %v1068_v11 = vsel %vm908_vm10, %v2314_v38, %v1434_v41  ;;  %v1290_v31 = vmul.f32 %v2570_v24, %v1066_v52  ;;  %v2572_v41 = vld [vmem:[#allocation9_spill] sm:$0xff] }
 0x21a   :  { %v1319_v6 = vadd.f32 %v1318_v51, %v1288_v7  ;;  %v1431_v15 = vadd.f32 -1.0, %v1660_v28  ;;  %v1662_v40 = vpop.eup %1661  ;;  %1671 = vpow2.f32 %v1000_v19  ;;  %v1006_v38 = vmul.f32 1.442695, %v951_v16  ;;  %v632_v7 = vpop.permute.xlu0 %631 }
 0x21b   :  { %v1664_v3 = vpop.eup %1663  ;;  %v1437_v14 = vadd.f32 -1.0, %v1662_v40  ;;  %v1069_v26 = vsel %vm909_vm12, %v2334_v0, %v1435_v25  ;;  %1673 = vpow2.f32 %v1002_v10  ;;  %v953_v44 = vmin.f32 %v2451_v29, 0.0 }
 0x21c   :  { %v1065_v51 = vsel %vm905_vm15, %v2369_v34, %v1431_v15  ;;  %v1067_v34 = vsel %vm907_vm1, %v2352_v30, %v1433_v62  ;;  %v2470_v30 = vadd.f32 %v2304_v21, %v2398_v60  ;;  %v1666_v8 = vpop.eup %1665  ;;  %v1294_v28 = vmul.f32 %v2324_v58, %v1070_v17  ;;  %v2482_v15 = vpop.permute.xlu1 %1222 }
 0x21d   :  { %v1289_v54 = vmul.f32 %v2569_v5, %v1065_v51  ;;  %v1291_v23 = vmul.f32 %v2571_v35, %v1067_v34  ;;  %v1668_v13 = vpop.eup %1667  ;;  %v1292_v0 = vmul.f32 %v2572_v41, %v1068_v11  ;;  %v1438_v49 = vadd.f32 -1.0, %v1664_v3 }
 0x21e   :  { %v954_v22 = vmin.f32 %v2461_v37, 0.0  ;;  %v1670_v21 = vpop.eup %1669  ;;  %1675 = vpow2.f32 %v1004_v63  ;;  %v2480_v62 = vadd.f32 %v2336_v39, %v2412_v56  ;;  %v1071_v19 = vsel %vm911_vm13, %v2348_v50, %v1437_v14 }
 0x21f   :  { %v1320_v27 = vadd.f32 %v1319_v6, %v1289_v54  ;;  %v1008_v6 = vmul.f32 1.442695, %v952_v42  ;;  %v1293_v58 = vmul.f32 %v2296_v18, %v1069_v26  ;;  %v1439_v17 = vadd.f32 -1.0, %v1666_v8  ;;  %v637_v54 = vpop.permute.xlu0 %636 }
 0x220   :  { %v955_v25 = vmin.f32 %v2470_v30, 0.0  ;;  %1677 = vpow2.f32 %v1006_v38  ;;  %v1010_v16 = vmul.f32 1.442695, %v953_v44  ;;  %v2490_v51 = vadd.f32 %v2354_v12, %v627_v47  ;;  %v1228_v24 = vpop.permute.xlu1 %1227 }
 0x221   :  { %v1321_v55 = vadd.f32 %v1320_v27, %v1290_v31  ;;  %v1440_v40 = vadd.f32 -1.0, %v1668_v13  ;;  %v1072_v39 = vsel %vm912_vm0, %v2373_v2, %v1438_v49  ;;  %vm913_vm3 = vcmp.gt.f32.partialorder %v2382_v61, 0.0 }
 0x222   :  { %v1012_v56 = vmul.f32 1.442695, %v954_v22  ;;  %1679 = vpow2.f32 %v1008_v6  ;;  %v2497_v18 = vadd.f32 %v2330_v32, %v632_v7  ;;  %v956_v5 = vmin.f32 %v2480_v62, 0.0 }
 0x223   :  { %v1322_v60 = vadd.f32 %v1321_v55, %v1291_v23  ;;  %v1295_v10 = vmul.f32 %v2356_v20, %v1071_v19  ;;  %v1441_v12 = vadd.f32 -1.0, %v1670_v21  ;;  %v1073_v47 = vsel %vm913_vm3, %v2382_v61, %v1439_v17 }
 0x224   :  { %v1014_v11 = vmul.f32 1.442695, %v955_v25  ;;  %v1672_v63 = vpop.eup %1671  ;;  %1681 = vpow2.f32 %v1010_v16  ;;  %v2503_v2 = vadd.f32 %v2342_v46, %v637_v54  ;;  %v957_v3 = vmin.f32 %v2490_v51, 0.0 }
 0x225   :  { %v1323_v52 = vadd.f32 %v1322_v60, %v1292_v0  ;;  %v1074_v32 = vsel %vm914_vm2, %v2389_v59, %v1440_v40  ;;  %v1296_v31 = vmul.f32 %v2385_v43, %v1072_v39  ;;  %vm915_vm4 = vcmp.gt.f32.partialorder %v2395_v1, 0.0  ;;  %v1674_v20 = vpop.eup %1673  ;;  %v1233_v43 = vpop.permute.xlu0 %1232 }
 0x226   :  { %1683 = vpow2.f32 %v1012_v56  ;;  %v958_v27 = vmin.f32 %v2497_v18, 0.0  ;;  %v1016_v42 = vmul.f32 1.442695, %v956_v5  ;;  %v1075_v46 = vsel %vm915_vm4, %v2395_v1, %v1441_v12  ;;  %v1238_v1 = vpop.permute.xlu1 %1237 }
 0x227   :  { %v1324_v50 = vadd.f32 %v1323_v52, %v1293_v58  ;;  %v1297_v14 = vmul.f32 %v2402_v4, %v1073_v47  ;;  %v1442_v26 = vadd.f32 -1.0, %v1672_v63  ;;  %1685 = vpow2.f32 %v1014_v11 }
 0x228   :  { %v1676_v38 = vpop.eup %1675  ;;  %v959_v59 = vmin.f32 %v2503_v2, 0.0  ;;  %v1018_v35 = vmul.f32 1.442695, %v957_v3  ;;  %v1298_v23 = vmul.f32 %v2424_v57, %v1074_v32  ;;  %v1443_v55 = vadd.f32 -1.0, %v1674_v20 }
 0x229   :  { %v1325_v34 = vadd.f32 %v1324_v50, %v1294_v28  ;;  %vm916_vm5 = vcmp.gt.f32.partialorder %v2406_v48, 0.0  ;;  %v1020_v7 = vmul.f32 1.442695, %v958_v27  ;;  %1687 = vpow2.f32 %v1016_v42 }
 0x22a   :  { %v1678_v44 = vpop.eup %1677  ;;  %v1299_v4 = vmul.f32 %v2453_v33, %v1075_v46  ;;  %v1444_v28 = vadd.f32 -1.0, %v1676_v38  ;;  %v1076_v41 = vsel %vm916_vm5, %v2406_v48, %v1442_v26  ;;  %vm917_vm6 = vcmp.gt.f32.partialorder %v2410_v45, 0.0  ;;  %v1243_v33 = vpop.permute.xlu0 %1242 }
 0x22b   :  { %v1326_v61 = vadd.f32 %v1325_v34, %v1295_v10  ;;  %v1022_v22 = vmul.f32 1.442695, %v959_v59  ;;  %1689 = vpow2.f32 %v1018_v35  ;;  %v1445_v57 = vadd.f32 -1.0, %v1678_v44  ;;  %v1248_v16 = vpop.permute.xlu1 %1247 }
 0x22c   :  { %v1680_v0 = vpop.eup %1679  ;;  %v1077_v21 = vsel %vm917_vm6, %v2410_v45, %v1443_v55  ;;  %vm918_vm7 = vcmp.gt.f32.partialorder %v2418_v9, 0.0  ;;  %v1300_v6 = vmul.f32 %v2482_v15, %v1076_v41  ;;  %1691 = vpow2.f32 %v1020_v7 }
 0x22d   :  { %v1327_v8 = vadd.f32 %v1326_v61, %v1296_v31  ;;  %v1078_v58 = vsel %vm918_vm7, %v2418_v9, %v1444_v28  ;;  %v1446_v48 = vadd.f32 -1.0, %v1680_v0  ;;  %vm919_vm8 = vcmp.gt.f32.partialorder %v2429_v53, 0.0 }
 0x22e   :  { %v1682_v60 = vpop.eup %1681  ;;  %v1301_v25 = vmul.f32 %v1228_v24, %v1077_v21  ;;  %1693 = vpow2.f32 %v1022_v22  ;;  %v1079_v45 = vsel %vm919_vm8, %v2429_v53, %v1445_v57  ;;  %v1302_v56 = vmul.f32 %v1233_v43, %v1078_v58  ;;  %v1253_v12 = vpop.permute.xlu0 %1252 }
 0x22f   :  { %v1328_v13 = vadd.f32 %v1327_v8, %v1297_v14  ;;  %v1447_v40 = vadd.f32 -1.0, %v1682_v60  ;;  %vm920_vm9 = vcmp.gt.f32.partialorder %v2441_v36, 0.0  ;;  %v1303_v54 = vmul.f32 %v1238_v1, %v1079_v45  ;;  %v1258_v3 = vpop.permute.xlu1 %1257 }
 0x230   :  { %v1684_v17 = vpop.eup %1683  ;;  %v1080_v5 = vsel %vm920_vm9, %v2441_v36, %v1446_v48  ;;  %vm921_vm10 = vcmp.gt.f32.partialorder %v2451_v29, 0.0  ;;  %vm922_vm11 = vcmp.gt.f32.partialorder %v2461_v37, 0.0  ;;  %vm923_vm12 = vcmp.gt.f32.partialorder %v2470_v30, 0.0 }
 0x231   :  { %v1329_v49 = vadd.f32 %v1328_v13, %v1298_v23  ;;  %v1686_v39 = vpop.eup %1685  ;;  %v1448_v15 = vadd.f32 -1.0, %v1684_v17  ;;  %v1081_v11 = vsel %vm921_vm10, %v2451_v29, %v1447_v40  ;;  %v1304_v53 = vmul.f32 %v1243_v33, %v1080_v5 }
 0x232   :  { %v1449_v47 = vadd.f32 -1.0, %v1686_v39  ;;  %v1305_v20 = vmul.f32 %v1248_v16, %v1081_v11  ;;  %vm924_vm13 = vcmp.gt.f32.partialorder %v2480_v62, 0.0  ;;  %v1263_v14 = vpop.permute.xlu0 %1262  ;;  %vm925_vm14 = vcmp.gt.f32.partialorder %v2490_v51, 0.0 }
 0x233   :  { %v1330_v19 = vadd.f32 %v1329_v49, %v1299_v4  ;;  %v1688_v9 = vpop.eup %1687  ;;  %v1082_v24 = vsel %vm922_vm11, %v2461_v37, %v1448_v15  ;;  %v1268_v59 = vpop.permute.xlu1 %1267  ;;  %vm926_vm15 = vcmp.gt.f32.partialorder %v2497_v18, 0.0  ;;  %vm927_vm0 = vcmp.gt.f32.partialorder %v2503_v2, 0.0 }
 0x234   :  { %v1450_v32 = vadd.f32 -1.0, %v1688_v9  ;;  %v1083_v61 = vsel %vm923_vm12, %v2470_v30, %v1449_v47  ;;  %v1306_v46 = vmul.f32 %v1253_v12, %v1082_v24 }
 0x235   :  { %v1331_v52 = vadd.f32 %v1330_v19, %v1300_v6  ;;  %v1690_v63 = vpop.eup %1689  ;;  %v1307_v8 = vmul.f32 %v1258_v3, %v1083_v61 }
 0x236   :  { %v1692_v31 = vpop.eup %1691  ;;  %v1451_v27 = vadd.f32 -1.0, %v1690_v63  ;;  %v1084_v38 = vsel %vm924_vm13, %v2480_v62, %v1450_v32  ;;  %v1273_v7 = vpop.permute.xlu0 %1272 }
 0x237   :  { %v1332_v50 = vadd.f32 %v1331_v52, %v1301_v25  ;;  %v1452_v26 = vadd.f32 -1.0, %v1692_v31  ;;  %v1308_v30 = vmul.f32 %v1263_v14, %v1084_v38  ;;  %v1278_v28 = vpop.permute.xlu1 %1277 }
 0x238   :  { %v1694_v42 = vpop.eup %1693  ;;  %v1085_v43 = vsel %vm925_vm14, %v2490_v51, %v1451_v27 }
 0x239   :  { %v1333_v10 = vadd.f32 %v1332_v50, %v1302_v56  ;;  %v1453_v35 = vadd.f32 -1.0, %v1694_v42  ;;  %v1086_v55 = vsel %vm926_vm15, %v2497_v18, %v1452_v26  ;;  %v1309_v13 = vmul.f32 %v1268_v59, %v1085_v43 }
 0x23a   :  { %v1310_v1 = vmul.f32 %v1273_v7, %v1086_v55  ;;  %v1350_v18 = vstv %s2563_s6 }
 0x23b   :  { %v1334_v34 = vadd.f32 %v1333_v10, %v1303_v54  ;;  %v1087_v62 = vsel %vm927_vm0, %v2503_v2, %v1453_v35 }
 0x23c   :  { %v1311_v41 = vmul.f32 %v1278_v28, %v1087_v62 }
 0x23d   :  { %v1335_v36 = vadd.f32 %v1334_v34, %v1304_v53 }
 0x23f   :  { %v1336_v29 = vadd.f32 %v1335_v36, %v1305_v20 }
 0x241   :  { %v1337_v37 = vadd.f32 %v1336_v29, %v1306_v46 }
 0x243   :  { %v1338_v23 = vadd.f32 %v1337_v37, %v1307_v8 }
 0x245   :  { %v1339_v44 = vadd.f32 %v1338_v23, %v1308_v30 }
 0x247   :  { %v1340_v4 = vadd.f32 %v1339_v44, %v1309_v13 }
 0x249   :  { %v1341_v0 = vadd.f32 %v1340_v4, %v1310_v1 }
 0x24b   :  { %v1342_v49 = vadd.f32 %v1341_v0, %v1311_v41 }
 0x24d   :  { %v1343_v51 = vrot.slane %v1342_v49, 4 }
 0x24f   :  { %v1344_v22 = vadd.f32 %v1343_v51, %v1342_v49 }
 0x251   :  { %v1345_v57 = vrot.slane %v1344_v22, 2 }
 0x253   :  { %v1346_v21 = vadd.f32 %v1345_v57, %v1344_v22 }
 0x255   :  { %v1347_v60 = vrot.slane %v1346_v21, 1 }
 0x257   :  { %v1348_v6 = vadd.f32 %v1347_v60, %v1346_v21 }
 0x259   :  { %v1351_v19 = vadd.f32 %v1350_v18, %v1348_v6 }
 0x25b   :  { %v1454_v33 = vmul.f32 -1.442695, %v1351_v19 }
 0x25d   :  { %1695 = vpow2.f32 %v1454_v33 }
 0x267   :  { %v1696_v2 = vpop.eup %1695 }
 0x268   :  { %v1355_v58 = vadd.f32 1.0, %v1696_v2 }
 0x26a   :  { %1697 = vrcp.f32 %v1355_v58 }
 0x274   :  { %v1698_v48 = vpop.eup %1697 }
 0x275   :  { %1358 = vst [vmem:[#allocation3] sm:$0x1] %v1698_v48 }
 0x276   :  { %1710 = shalt.err (!%p1707_p4)
}
 0x277   :  { %s1711_s8 = scalar_lea.hbm %s2564_s7, 16 }
 0x278   :  { %p1712_p5 = scmp.ne.s32.totalorder %s2564_s7, %s1711_s8  ;;  %p1715_p6 = scmp.lt.u32.totalorder %s1711_s8, %s2564_s7 }
 0x27a   :  { %p1717_p7 = pnand %p1715_p6, %p1712_p5 }
 0x27c   :  { %1720 = shalt.err (!%p1717_p7)
}
 0x27d   :  { %1368 = dma.vmem_to_hbm [thread:$0]  %s1366_s28, 16, %s2564_s7, [#allocation4]  }
 0x27e   :  { %1721 = dma.done.wait [#allocation4], 16  }
 0x27f   :  { %1722 = vsyncadd [#allocation4], 4294967280 }
 0x280   :  { %1372 = vsyncpa [#allocation4], 1 }

</bundles_post_ra>
